<compile_context>
chip_gen: v5e
topology: v5e:2x2
jax: 0.10.0
libtpu: 0.0.40
codegen_flags: <defaults>
</compile_context>

<pallas_src>
import functools

import jax
import jax.numpy as jnp
from jax.experimental import pallas as pl
from jax.experimental.pallas import tpu as pltpu

ALPHA = 1.0
GAMMA = 3.0          # integral -> implemented as an exact cube inside the kernel

_CHUNK_ELEMS = 8192  # ~f32 logits elements live per compute chunk (vreg budget)


def _static_or_fori(count, body, init):
    """Run body(idx, carry) `count` times (static count); unroll small counts."""
    if count <= 0:
        return init
    if count <= 8:
        val = init
        for idx in range(count):
            val = body(idx, val)
        return val
    return jax.lax.fori_loop(0, count, body, init)


def _focal_kernel(logits_ref, tgt_ref, out_ref, *, n_total, hw, rb, cw,
                  needs_lane_mask, needs_batch_mask, alpha):
    i = pl.program_id(0)          # batch-block index ("parallel")
    j = pl.program_id(1)          # lane-block index  ("arbitrary", accumulated)
    bn, c, tl = logits_ref.shape

    @pl.when(j == 0)
    def _():
        out_ref[...] = jnp.zeros_like(out_ref)

    lane0 = jax.lax.broadcasted_iota(jnp.int32, (1, 128), 1) == 0

    def chunk_floss(b0, rows, s0, cols):
        """Per-element focal loss for a (rows, C, cols) sub-chunk (masked)."""
        x = logits_ref[pl.ds(b0, rows), :, pl.ds(s0, cols)].astype(jnp.float32)
        t = tgt_ref[pl.ds(b0, rows), :, pl.ds(s0, cols)]          # (rows, 1, cols)

        valid = None
        if needs_lane_mask:                 # ragged last lane block only
            col = (j * tl + s0
                   + jax.lax.broadcasted_iota(jnp.int32, (1, 1, cols), 2))
            valid = col < hw
        if needs_batch_mask:                # ragged last batch block only
            row = (i * bn + b0
                   + jax.lax.broadcasted_iota(jnp.int32, (rows, 1, cols), 0))
            rv = row < n_total
            valid = rv if valid is None else jnp.logical_and(valid, rv)
        if valid is not None:
            x = jnp.where(valid, x, 0.0)    # keep the LSE finite on padding

        # stable log-sum-exp over the (small) class / sublane axis
        m = jnp.max(x, axis=1, keepdims=True)                     # (rows,1,cols)
        e = jnp.exp(x - m)                                        # (rows,C,cols)
        sumexp = jnp.sum(e, axis=1, keepdims=True)                # (rows,1,cols)

        # one-hot gather of exp(x_t - m); bce = logsumexp - x_t = log(sumexp)-log(e_t)
        cls = jax.lax.broadcasted_iota(jnp.int32, (rows, c, cols), 1)
        e_t = jnp.sum(jnp.where(cls == t, e, 0.0), axis=1, keepdims=True)
        e_t = jnp.maximum(e_t, 1e-37)       # guard log(0) on extreme logit spreads

        bce = jnp.log(sumexp) - jnp.log(e_t)            # exact logs (EUP), no x_t reduce
        pt = e_t * pl.reciprocal(sumexp, approx=True)   # softmax prob of the target
        omp = jnp.maximum(1.0 - pt, 0.0)
        floss = (alpha * bce) * (omp * omp * omp)       # gamma = 3 -> exact cube
        # TODO(synk): non-integer gamma would need the exp(gamma*log(1-pt)) path.

        if valid is not None:
            floss = jnp.where(valid, floss, 0.0)
        return floss                                     # (rows, 1, cols)

    def fold_chunk(b0, rows, s0, cols, part):
        fl = chunk_floss(b0, rows, s0, cols)
        nf = cols // 128
        for q in range(nf):                              # lane fold: pure VPU adds
            part = part + jnp.sum(fl[:, :, q * 128:(q + 1) * 128], axis=0)
        if cols - nf * 128:                              # ragged lane tail: one XLU reduce
            part = part + jnp.where(lane0, jnp.sum(fl[:, :, nf * 128:]), 0.0)
        return part

    n_col_full = tl // cw
    col_tail = tl - n_col_full * cw
    n_row = bn // rb                                     # bn is a multiple of rb

    def row_body(r, part):
        b0 = r * rb

        def col_body(k, p):
            s0 = k * cw
            if cw % 128 == 0 and not isinstance(s0, int):
                s0 = pl.multiple_of(s0, 128)
            return fold_chunk(b0, rb, s0, cw, p)

        part = _static_or_fori(n_col_full, col_body, part)
        if col_tail:
            part = fold_chunk(b0, rb, n_col_full * cw, col_tail, part)
        return part

    part = _static_or_fori(n_row, row_body, jnp.zeros((1, 128), jnp.float32))
    out_ref[...] += part[None]                           # (1, 1, 128) accumulator


def _choose_tiles(n, c, hw, itemsize):
    """Pick (bn, tl) = batch rows / lane columns per grid step (DMA block), and
    (rb, cw) = rows / columns per in-kernel compute chunk (vreg budget)."""
    target = 2 << 20             # logits bytes per grid step (per pipeline buffer)
    budget = 12 << 20            # double-buffered (logits + int32 targets) VMEM cap
    per_col = c * itemsize + 4   # one lane column of one image
    total_cols = max(1, min(budget // (2 * per_col),
                            max(1, target // max(1, c * itemsize))))

    if hw <= total_cols:
        tl = hw                                          # full lane axis per image
        bn = max(1, min(n, total_cols // max(1, hw)))    # fold images into the block
        if n >= 2:
            bn = min(bn, (n + 1) // 2)                   # keep both v7x TCs busy
    else:
        tl = min(hw, max(128, (total_cols // 128) * 128))
        bn = 1

    cw = min(tl, max(128, ((_CHUNK_ELEMS // max(1, c)) // 128) * 128))
    rb = max(1, min(bn, _CHUNK_ELEMS // max(1, c * cw)))
    bn = max(rb, (bn // rb) * rb)                        # no ragged row chunks in-kernel
    return bn, tl, cw, rb


def focal_loss(preds, targets, *, alpha=ALPHA):
    """preds: (N, C, H, W) float logits; targets: (N, H, W) int class ids."""
    n, c, h, w = preds.shape
    hw = h * w
    itemsize = jnp.dtype(preds.dtype).itemsize
    logits = preds.reshape(n, c, hw)                     # free view: no transpose / pad
    tgts = targets.reshape(n, 1, hw).astype(jnp.int32)

    bn, tl, cw, rb = _choose_tiles(n, c, hw, itemsize)
    n_batch_blk = pl.cdiv(n, bn)
    n_lane_blk = pl.cdiv(hw, tl)
    needs_lane_mask = (hw % tl) != 0
    needs_batch_mask = (n % bn) != 0

    kernel = functools.partial(
        _focal_kernel, n_total=n, hw=hw, rb=rb, cw=cw,
        needs_lane_mask=needs_lane_mask, needs_batch_mask=needs_batch_mask,
        alpha=float(alpha))

    partials = pl.pallas_call(
        kernel,
        out_shape=jax.ShapeDtypeStruct((n_batch_blk, 1, 128), jnp.float32),
        grid_spec=pltpu.PrefetchScalarGridSpec(
            num_scalar_prefetch=0,
            grid=(n_batch_blk, n_lane_blk),
            in_specs=[
                pl.BlockSpec((bn, c, tl), lambda i, j: (i, 0, j)),
                pl.BlockSpec((bn, 1, tl), lambda i, j: (i, 0, j)),
            ],
            out_specs=pl.BlockSpec((1, 1, 128), lambda i, j: (i, 0, 0)),
        ),
        compiler_params=pltpu.CompilerParams(
            dimension_semantics=("parallel", "arbitrary"),
            vmem_limit_bytes=32 << 20,
        ),
        cost_estimate=pl.CostEstimate(
            flops=int(n * hw * (8 * c + 16)),
            transcendentals=int(n * hw * (c + 3)),
            bytes_accessed=int(n * hw * (c * itemsize + 4) + 512 * n_batch_blk),
        ),
    )(logits, tgts)

    return jnp.sum(partials) / (n * hw)


def focal_forward(inputs, targets):
    """Mirrors `Focal.forward`: `inputs` is a dict with key 'preds'."""
    return focal_loss(inputs["preds"], targets)


if __name__ == "__main__":
    key = jax.random.PRNGKey(0)
    k1, k2 = jax.random.split(key)
    B, C, H, W = 2, 4, 16, 16
    preds = jax.random.normal(k1, (B, C, H, W), dtype=jnp.float32)
    targets = jax.random.randint(k2, (B, H, W), 0, C, dtype=jnp.int32)

    loss = jax.block_until_ready(focal_forward({"preds": preds}, targets))

    # pure-JAX reference check
    lp = jax.nn.log_softmax(preds, axis=1)                          # (B, C, H, W)
    bce = -jnp.take_along_axis(lp, targets[:, None], axis=1)[:, 0]  # (B, H, W)
    pt = jnp.exp(-bce)
    ref = jnp.mean(ALPHA * (1.0 - pt) ** GAMMA * bce)

    # pt uses the EUP approx reciprocal -> allow ~1e-3 rel err
    assert jnp.allclose(loss, ref, rtol=2e-3, atol=1e-5), (loss, ref)

    print("KERNEL_OK")
</pallas_src>

<mosaic_0001>
module attributes {stable_mosaic.version = 11 : i64} {
  func.func @_focal_kernel(%arg0: i32, %arg1: i32, %arg2: memref<1x4x256xf32, #tpu.memory_space<vmem>>, %arg3: memref<1x1x256xi32, #tpu.memory_space<vmem>>, %arg4: memref<1x1x128xf32, #tpu.memory_space<vmem>>) attributes {dimension_semantics = [#tpu.dimension_semantics<parallel>, #tpu.dimension_semantics<arbitrary>], iteration_bounds = array<i64: 2, 1>, scalar_prefetch = 0 : i64, scratch_operands = 0 : i64, tpu.core_type = #tpu.core_type<tc>, window_params = [{transform_indices = @transform_0, window_bounds = array<i64: 1, 4, 256>}, {transform_indices = @transform_1, window_bounds = array<i64: 1, 1, 256>}, {transform_indices = @transform_2, window_bounds = array<i64: 1, 1, 128>}]} {
    %c0_i32 = arith.constant 0 : i32
    %0 = arith.cmpi eq, %arg1, %c0_i32 : i32
    %1 = arith.extui %0 : i1 to i32
    %c0_i32_0 = arith.constant 0 : i32
    %2 = arith.cmpi ne, %1, %c0_i32_0 : i32
    scf.if %2 {
      %cst_22 = arith.constant 0.000000e+00 : f32
      %46 = vector.broadcast %cst_22 : f32 to vector<1x1x128xf32>
      %c0_23 = arith.constant 0 : index
      %c0_24 = arith.constant 0 : index
      %c0_25 = arith.constant 0 : index
      %47 = vector.load %arg4[%c0_23, %c0_24, %c0_25] : memref<1x1x128xf32, #tpu.memory_space<vmem>>, vector<1x1x128xf32>
      tpu.vector_store %arg4[%c0_23, %c0_24, %c0_25], %46 {strides = array<i32>} : memref<1x1x128xf32, #tpu.memory_space<vmem>>, vector<1x1x128xf32>,
    } else {
    }
    %cst = arith.constant 0.000000e+00 : f32
    %3 = vector.broadcast %cst : f32 to vector<1x128xf32>
    %c0 = arith.constant 0 : index
    %c0_1 = arith.constant 0 : index
    %c0_2 = arith.constant 0 : index
    %4 = vector.load %arg2[%c0, %c0_1, %c0_2] : memref<1x4x256xf32, #tpu.memory_space<vmem>>, vector<1x4x256xf32>
    %c0_3 = arith.constant 0 : index
    %c0_4 = arith.constant 0 : index
    %c0_5 = arith.constant 0 : index
    %5 = vector.load %arg3[%c0_3, %c0_4, %c0_5] : memref<1x1x256xi32, #tpu.memory_space<vmem>>, vector<1x1x256xi32>
    %cst_6 = arith.constant dense<0xFF800000> : vector<1x256xf32>
    %6 = vector.multi_reduction <maximumf>, %4, %cst_6 [1] : vector<1x4x256xf32> to vector<1x256xf32>
    %7 = vector.shape_cast %6 : vector<1x256xf32> to vector<1x1x256xf32>
    %8 = vector.broadcast %7 : vector<1x1x256xf32> to vector<1x4x256xf32>
    %9 = arith.subf %4, %8 : vector<1x4x256xf32>
    %10 = math.exp %9 : vector<1x4x256xf32>
    %cst_7 = arith.constant dense<0.000000e+00> : vector<1x256xf32>
    %11 = vector.multi_reduction <add>, %10, %cst_7 [1] : vector<1x4x256xf32> to vector<1x256xf32>
    %12 = vector.shape_cast %11 : vector<1x256xf32> to vector<1x1x256xf32>
    %13 = tpu.iota {dimensions = array<i32: 1>} : vector<1x4x256xi32>
    %14 = vector.broadcast %5 : vector<1x1x256xi32> to vector<1x4x256xi32>
    %15 = arith.cmpi eq, %13, %14 : vector<1x4x256xi32>
    %cst_8 = arith.constant 0.000000e+00 : f32
    %16 = vector.broadcast %cst_8 : f32 to vector<1x4x256xf32>
    %17 = arith.select %15, %10, %16 : vector<1x4x256xi1>, vector<1x4x256xf32>
    %cst_9 = arith.constant dense<0.000000e+00> : vector<1x256xf32>
    %18 = vector.multi_reduction <add>, %17, %cst_9 [1] : vector<1x4x256xf32> to vector<1x256xf32>
    %19 = vector.shape_cast %18 : vector<1x256xf32> to vector<1x1x256xf32>
    %cst_10 = arith.constant 9.99999991E-38 : f32
    %20 = vector.broadcast %cst_10 : f32 to vector<1x1x256xf32>
    %21 = arith.maximumf %19, %20 : vector<1x1x256xf32>
    %22 = math.log %12 : vector<1x1x256xf32>
    %23 = math.log %21 : vector<1x1x256xf32>
    %24 = arith.subf %22, %23 : vector<1x1x256xf32>
    %25 = tpu.reciprocal %12 {approx = true} : vector<1x1x256xf32> -> vector<1x1x256xf32>
    %26 = arith.mulf %21, %25 : vector<1x1x256xf32>
    %cst_11 = arith.constant 1.000000e+00 : f32
    %27 = vector.broadcast %cst_11 : f32 to vector<1x1x256xf32>
    %28 = arith.subf %27, %26 : vector<1x1x256xf32>
    %cst_12 = arith.constant 0.000000e+00 : f32
    %29 = vector.broadcast %cst_12 : f32 to vector<1x1x256xf32>
    %30 = arith.maximumf %28, %29 : vector<1x1x256xf32>
    %cst_13 = arith.constant 1.000000e+00 : f32
    %31 = vector.broadcast %cst_13 : f32 to vector<1x1x256xf32>
    %32 = arith.mulf %31, %24 : vector<1x1x256xf32>
    %33 = arith.mulf %30, %30 : vector<1x1x256xf32>
    %34 = arith.mulf %33, %30 : vector<1x1x256xf32>
    %35 = arith.mulf %32, %34 : vector<1x1x256xf32>
    %36 = vector.extract_strided_slice %35 {offsets = [0, 0, 0], sizes = [1, 1, 128], strides = [1, 1, 1]} : vector<1x1x256xf32> to vector<1x1x128xf32>
    %cst_14 = arith.constant dense<0.000000e+00> : vector<1x128xf32>
    %37 = vector.multi_reduction <add>, %36, %cst_14 [0] : vector<1x1x128xf32> to vector<1x128xf32>
    %38 = arith.addf %3, %37 : vector<1x128xf32>
    %39 = vector.extract_strided_slice %35 {offsets = [0, 0, 128], sizes = [1, 1, 128], strides = [1, 1, 1]} : vector<1x1x256xf32> to vector<1x1x128xf32>
    %cst_15 = arith.constant dense<0.000000e+00> : vector<1x128xf32>
    %40 = vector.multi_reduction <add>, %39, %cst_15 [0] : vector<1x1x128xf32> to vector<1x128xf32>
    %41 = arith.addf %38, %40 : vector<1x128xf32>
    %c0_16 = arith.constant 0 : index
    %c0_17 = arith.constant 0 : index
    %c0_18 = arith.constant 0 : index
    %42 = vector.load %arg4[%c0_16, %c0_17, %c0_18] : memref<1x1x128xf32, #tpu.memory_space<vmem>>, vector<1x1x128xf32>
    %43 = vector.shape_cast %41 : vector<1x128xf32> to vector<1x1x128xf32>
    %44 = arith.addf %42, %43 : vector<1x1x128xf32>
    %c0_19 = arith.constant 0 : index
    %c0_20 = arith.constant 0 : index
    %c0_21 = arith.constant 0 : index
    %45 = vector.load %arg4[%c0_19, %c0_20, %c0_21] : memref<1x1x128xf32, #tpu.memory_space<vmem>>, vector<1x1x128xf32>
    tpu.vector_store %arg4[%c0_19, %c0_20, %c0_21], %44 {strides = array<i32>} : memref<1x1x128xf32, #tpu.memory_space<vmem>>, vector<1x1x128xf32>,
    return
  }
  func.func @transform_0(%arg0: i32, %arg1: i32) -> (i32, i32, i32) {
    %c0_i32 = arith.constant 0 : i32
    %c0_i32_0 = arith.constant 0 : i32
    return %arg0, %c0_i32, %arg1 : i32, i32, i32
  }
  func.func @transform_1(%arg0: i32, %arg1: i32) -> (i32, i32, i32) {
    %c0_i32 = arith.constant 0 : i32
    %c0_i32_0 = arith.constant 0 : i32
    return %arg0, %c0_i32, %arg1 : i32, i32, i32
  }
  func.func @transform_2(%arg0: i32, %arg1: i32) -> (i32, i32, i32) {
    %c0_i32 = arith.constant 0 : i32
    %c0_i32_0 = arith.constant 0 : i32
    %c0_i32_1 = arith.constant 0 : i32
    return %arg0, %c0_i32, %c0_i32_0 : i32, i32, i32
  }
}

</mosaic_0001>

<bundles_post_ra>
// kernel: tpu_custom_call.1
= control target key start
LH: loop header
LB: loop body
LE: loop exit
PB: predicated region body
PF: predicated region fallthrough
CT: control target
= control target key end

     0   :  { %7 = vsyncpa [#allocation3], 0  ;;  %s869_s0 = inlined_call_operand.hbm [shape: f32[2,4,256], index: 0, kind: input, shape index: {}]   ;;  %s870_s1 = inlined_call_operand.hbm [shape: s32[2,1,256], index: 1, kind: input, shape index: {}]   ;;  %s871_s2 = inlined_call_operand.hbm [shape: f32[2,1,128], index: 2, kind: output, shape index: {}]  }
   0x1   :  { %9 = vsyncpa [#allocation3 + $0x1], 0 }
   0x2   :  { %10 = vsyncpa [#allocation6], 0 }
   0x3   :  { %12 = vsyncpa [#allocation6 + $0x1], 0 }
   0x4   :  { %13 = vsyncpa [#allocation4], 0 }
   0x5   :  { %15 = vsyncpa [#allocation4 + $0x1], 0  ;;  %s714_s9 = smov 0   ;;  %s716_s10 = smov 0  }
   0x6   :  { %s718_s11 = smov 0   ;;  %s720_s12 = smov 0  }
   0x7   :  { %s722_s13 = smov 0   ;;  %s724_s14 = smov 0  }
   0x8 LB: > { %s453_s15 = sadd.s32 4294967295, %s696_s14   ;;  %s454_s16 = sadd.s32 4294967294, %s696_s14   ;;  %s696_s14 = sphi %s724_s14, %s21_s14   ;;  %s692_s13 = sphi %s722_s13, %s881_s13   ;;  %s688_s12 = sphi %s720_s12, %s880_s12   ;;  %s684_s11 = sphi %s718_s11, %s879_s11   ;;  %s680_s10 = sphi %s716_s10, %s878_s10   ;;  %s676_s9 = sphi %s714_s9, %s877_s9  }
   0x9   : > { %s33_s17 = sadd.s32 1, %s692_s13  ;;  %s42_s18 = sadd.s32 1, %s684_s11 }
   0xa   : > { %p35_p0 = scmp.ge.s32.totalorder %s33_s17, 2  ;;  %p49_p1 = scmp.ne.s32.totalorder %s684_s11, %s680_s10 }
   0xb   : > { %p50_p2 = scmp.eq.s32.totalorder %s696_s14, 0  ;;  %p55_p3 = scmp.ne.s32.totalorder %s680_s10, %s676_s9 }
   0xc   : > { %s883_s17 = smov (%p35_p0, %s33_s17), 0  ;;  %p56_p5 = scmp.eq.s32.totalorder %s453_s15, 0 }
   0xd   : > { %p755_p4 = por %p50_p2, %p49_p1  ;;  %s37_s20 = ssub.s32 %s692_s13, %s883_s17 }
   0xe   : > { %p107_p6 = scmp.eq.s32.totalorder %s453_s15, 1  ;;  %p40_p7 = scmp.eq.s32.totalorder %s37_s20, 0 }
   0xf   : > { %p761_p8 = por %p56_p5, %p55_p3  ;;  %p113_p10 = scmp.eq.s32.totalorder %s454_s16, 1 }
  0x10   : > { %p765_p9 = por %p107_p6, %p49_p1  ;;  %p456_p12 = scmp.ge.s32.totalorder %s696_s14, 2 }
  0x11   : > { %s770_s23 = scalar_select %p40_p7, %s684_s11, %s42_s18  }
  0x12   : > { %p772_p11 = por %p113_p10, %p55_p3  ;;  %p485_p13 = scmp.lt.s32.totalorder %s696_s14, 2 }
  0x13   : > { %s133_s25 = sand.u32 1, %s684_s11   ;;  %s467_s27 = sshll.u32 %s692_s13, 3 }
  0x14   : > { %s457_s26 = sshll.u32 %s133_s25, 3  ;;  %s144_s30 = scalar_lea.hbm %s869_s0, %s467_s27 }
  0x15   : > { %s137_s3 = scalar_lea.vmem [#allocation2], %s457_s26  ;;  %s146_s5 = sshll.u32 %s144_s30, 4  ;;  %s147_s5 = int_to_ptr.hbm [resolvable:$true] %s146_s5 }
  0x16   : > { %s148_s4 = sshll.u32 %s137_s3, 4  ;;  %p785_p0 = pnand %p485_p13, %p755_p4  ;;  %s149_s4 = int_to_ptr.vmem [resolvable:$true] %s148_s4 }
  0x17   : > { %p462_p1 = scmp.ge.s32.totalorder %s696_s14, 1  ;;  %p174_p2 = scmp.lt.s32.totalorder %s696_s14, 3 }
  0x18   : > { %s134_s7 = scalar_lea.sflag [#allocation3], %s133_s25  ;;  %s460_s8 = sshll.u32 %s133_s25, 1 }
  0x19   : > { %477 = dma.hbm_to_vmem [thread:$0]  (!%p785_p0), %s147_s5, 128, %s149_s4, %s134_s7  }
  0x1a   : > { %p175_p3 = pnand %p462_p1, %p174_p2  ;;  %s461_s15 = sshll.u32 %s692_s13, 1 }
  0x1b   : > { %s165_s20 = scalar_lea.hbm %s870_s1, %s461_s15  ;;  %s159_s26 = scalar_lea.vmem [#allocation5], %s460_s8 }
  0x1c   : > { %s169_s19 = sshll.u32 %s159_s26, 4  ;;  %s167_s27 = sshll.u32 %s165_s20, 4  ;;  %s170_s19 = int_to_ptr.vmem [resolvable:$true] %s169_s19  ;;  %s168_s27 = int_to_ptr.hbm [resolvable:$true] %s167_s27 }
  0x1d   : > { %s156_s28 = scalar_lea.sflag [#allocation6], %s133_s25  ;;  %178 = sbr.rel (%p175_p3) target bundleno = 127 (0x7f), region = 28 }
  0x1e   : > { %480 = dma.hbm_to_vmem [thread:$0]  (!%p785_p0), %s168_s27, 32, %s170_s19, %s156_s28  }
  0x1f   : > { %s800_s29 = sand.u32 (!%p175_p3), 1, %s680_s10  }
  0x20   : > { %s463_s30 = sshll.u32 (!%p175_p3), %s800_s29, 3  ;;  %s181_s3 = scalar_lea.sflag (!%p175_p3), [#allocation3], %s800_s29 }
  0x21   : > { %s184_s4 = scalar_lea.vmem (!%p175_p3), [#allocation2], %s463_s30 }
  0x22   : > { %663 = dma.done.wait (%p761_p8), %s181_s3, 128  }
  0x23   : > { %665 = vsyncadd (%p761_p8), %s181_s3, 4294967168  ;;  %s464_s25 = sshll.u32 %s800_s29, 1  ;;  %s191_s5 = scalar_lea.sflag [#allocation6], %s800_s29 }
  0x24   : > { %s810_s6 = scalar_lea.vmem [#allocation5], %s464_s25 }
  0x25   : > { %667 = dma.done.wait (%p761_p8), %s191_s5, 32  }
  0x26   : > { %669 = vsyncadd (%p761_p8), %s191_s5, 4294967264  ;;  %v227_v0 = vld [vmem:[%s184_s4] sm:$0xff]  ;;  %vm235_vm0 = vcmask 1043456   ;;  %s820_s21 = scalar_lea.vmem [#allocation7], %s800_s29  ;;  %v698_v21 = vmov 0.0   ;;  %v278_v23 = vlaneseq  ;;  %s347_s15 = scalar_lea.hbm %s871_s2, %s688_s12 }
  0x27   : > { %230 = vst [vmem:[#allocation1] ss:$2 sm:$0xff] %v227_v0  ;;  %v228_v24 = vld [vmem:[%s810_s6] sm:$0x3]  ;;  %s349_s16 = sshll.u32 %s820_s21, 4  ;;  %s351_s18 = sshll.u32 %s347_s15, 4  ;;  %s350_s16 = int_to_ptr.vmem [resolvable:$true] %s349_s16  ;;  %s352_s18 = int_to_ptr.hbm [resolvable:$true] %s351_s18 }
  0x28   : > { %226 = vst [vmem:[%s820_s21] sm:$0x1] %v698_v21  ;;  %v279_v29 = vshrl.u32 %v278_v23, 7  ;;  %v280_v32 = vperm.slane %v228_v24, 0  ;;  %v281_v33 = vperm.slane %v228_v24, 1  ;;  %s339_s20 = scalar_lea.sflag [#allocation4], %s800_s29  ;;  %s624_s26 = sshra.s32 %s352_s18, 4  ;;  %s625_s26 = int_to_ptr.hbm [resolvable:$true] %s624_s26 }
  0x29   : > { %s626_s19 = scalar_lea.hbm %s625_s26, 1  ;;  %s630_s28 = scalar_lea.hbm %s871_s2, 2 }
  0x2a   : > { %vm282_vm1 = vcmp.eq.s32.totalorder %v279_v29, %v280_v32  ;;  %vm283_vm2 = vcmp.eq.s32.totalorder %v279_v29, %v281_v33  ;;  %p627_p4 = scmp.ne.s32.totalorder %s625_s26, %s626_s19  ;;  %p631_p7 = scmp.lt.s32.totalorder %s625_s26, %s871_s2 }
  0x2b   : > { %p632_p8 = scmp.lt.s32.totalorder %s630_s28, %s626_s19 }
  0x2c   : > { %p628_p5 = pnand %p627_p4, %p765_p9 }
  0x2d   : > { %p633_p10 = por %p632_p8, %p631_p7 }
  0x2e   : > { %v231_v1 = vld.sshfl [vmem:[#allocation1] sm:$0xff pattern:$0x75316420]  ;;  %v232_v2 = vld.sshfl [vmem:[#allocation1 + $0x8] sm:$0xff pattern:$0x75316420]  ;;  %p629_p6 = pneg %p628_p5 }
  0x2f   : > { %v236_v3 = vsel %vm235_vm0, %v231_v1, -inf  ;;  %v243_v4 = vsel %vm235_vm0, %v232_v2, -inf  ;;  %v335_v24 = vld [vmem:[%s820_s21] sm:$0x1] }
  0x30   : > { %v237_v5 = vrot.slane %v236_v3, 4  ;;  %v244_v6 = vrot.slane %v243_v4, 4  ;;  %p634_p13 = pnand %p633_p10, %p629_p6 }
  0x32   : > { %v238_v7 = vmax.f32 %v236_v3, %v237_v5  ;;  %v245_v8 = vmax.f32 %v243_v4, %v244_v6 }
  0x34   : > { %v239_v9 = vrot.slane %v238_v7, 2  ;;  %v246_v10 = vrot.slane %v245_v8, 2 }
  0x36   : > { %v240_v11 = vmax.f32 %v238_v7, %v239_v9  ;;  %v247_v12 = vmax.f32 %v245_v8, %v246_v10 }
  0x38   : > { %v241_v13 = vrot.slane %v240_v11, 1  ;;  %v248_v14 = vrot.slane %v247_v12, 1 }
  0x3a   : > { %v249_v15 = vmax.f32 %v247_v12, %v248_v14  ;;  %v242_v16 = vmax.f32 %v240_v11, %v241_v13 }
  0x3c   : > { %v252_v17 = vrot.slane %v249_v15, 4 }
  0x3e   : > { %v253_v18 = vsel %vm235_vm0, %v242_v16, %v252_v17 }
  0x3f   : > { %v255_v19 = vsub.f32 %v227_v0, %v253_v18 }
  0x41   : > { %v256_v20 = vmul.f32 1.442695, %v255_v19 }
  0x43   : > { %536 = vpow2.f32 %v256_v20 }
  0x49   : > { %v537_v22 = vpop.eup %536 }
  0x4a   : > { %259 = vst [vmem:[#allocation1] ss:$2 sm:$0xff] %v537_v22 }
  0x51   : > { %v260_v25 = vld.sshfl [vmem:[#allocation1] sm:$0xff pattern:$0x75316420]  ;;  %v261_v26 = vld.sshfl [vmem:[#allocation1 + $0x8] sm:$0xff pattern:$0x75316420] }
  0x52   : > { %v264_v27 = vsel %vm235_vm0, %v260_v25, 0.0  ;;  %v271_v28 = vsel %vm235_vm0, %v261_v26, 0.0  ;;  %284 = vst [vmem:[#allocation1] ss:$2 sm:$0xff] %v537_v22 }
  0x53   : > { %v265_v30 = vrot.slane %v264_v27, 4  ;;  %v272_v31 = vrot.slane %v271_v28, 4 }
  0x55   : > { %v266_v34 = vadd.f32 %v265_v30, %v264_v27  ;;  %v273_v35 = vadd.f32 %v272_v31, %v271_v28 }
  0x57   : > { %v267_v36 = vrot.slane %v266_v34, 2  ;;  %v274_v37 = vrot.slane %v273_v35, 2 }
  0x59   : > { %v268_v38 = vadd.f32 %v267_v36, %v266_v34  ;;  %v275_v39 = vadd.f32 %v274_v37, %v273_v35  ;;  %v285_v40 = vld.sshfl [vmem:[#allocation1] sm:$0xff pattern:$0x75316420]  ;;  %v286_v41 = vld.sshfl [vmem:[#allocation1 + $0x8] sm:$0xff pattern:$0x75316420] }
  0x5a   : > { %v289_v42 = vsel %vm282_vm1, %v285_v40, 0.0  ;;  %v290_v43 = vsel %vm283_vm2, %v286_v41, 0.0 }
  0x5b   : > { %v269_v44 = vrot.slane %v268_v38, 1  ;;  %v276_v45 = vrot.slane %v275_v39, 1  ;;  %v291_v46 = vsel %vm235_vm0, %v289_v42, 0.0  ;;  %v298_v47 = vsel %vm235_vm0, %v290_v43, 0.0 }
  0x5c   : > { %v292_v48 = vrot.slane %v291_v46, 4  ;;  %v299_v49 = vrot.slane %v298_v47, 4 }
  0x5d   : > { %v270_v50 = vadd.f32 %v269_v44, %v268_v38  ;;  %v277_v53 = vadd.f32 %v276_v45, %v275_v39 }
  0x5e   : > { %v293_v51 = vadd.f32 %v292_v48, %v291_v46  ;;  %v300_v52 = vadd.f32 %v299_v49, %v298_v47 }
  0x5f   : > { %538 = vrcp.f32 %v270_v50 }
  0x60   : > { %v294_v54 = vrot.slane %v293_v51, 2  ;;  %v301_v55 = vrot.slane %v300_v52, 2  ;;  %540 = vrcp.f32 %v277_v53 }
  0x61   : > { %542 = vlog2.f32 %v270_v50 }
  0x62   : > { %v295_v56 = vadd.f32 %v294_v54, %v293_v51  ;;  %v302_v57 = vadd.f32 %v301_v55, %v300_v52  ;;  %544 = vlog2.f32 %v277_v53 }
  0x64   : > { %v296_v58 = vrot.slane %v295_v56, 1  ;;  %v303_v59 = vrot.slane %v302_v57, 1 }
  0x65   : > { %v539_v62 = vpop.eup %538 }
  0x66   : > { %v297_v60 = vadd.f32 %v296_v58, %v295_v56  ;;  %v304_v61 = vadd.f32 %v303_v59, %v302_v57  ;;  %v541_v1 = vpop.eup %540 }
  0x67   : > { %v543_v6 = vpop.eup %542 }
  0x68   : > { %v305_v63 = vmax.f32 %v297_v60, 1e-37  ;;  %v306_v0 = vmax.f32 %v304_v61, 1e-37  ;;  %v545_v9 = vpop.eup %544  ;;  %v308_v14 = vmul.f32 0.6931472, %v543_v6 }
  0x69   : > { %v310_v16 = vmul.f32 0.6931472, %v545_v9 }
  0x6a   : > { %546 = vlog2.f32 %v305_v63  ;;  %v319_v2 = vmul.f32 %v539_v62, %v305_v63  ;;  %v320_v3 = vmul.f32 %v541_v1, %v306_v0 }
  0x6b   : > { %548 = vlog2.f32 %v306_v0 }
  0x6c   : > { %v321_v4 = vsub.f32 1.0, %v319_v2  ;;  %v322_v5 = vsub.f32 1.0, %v320_v3 }
  0x6e   : > { %v323_v7 = vmax.f32 %v321_v4, 0.0  ;;  %v324_v8 = vmax.f32 %v322_v5, 0.0 }
  0x70   : > { %v547_v10 = vpop.eup %546  ;;  %v325_v11 = vmul.f32 %v323_v7, %v323_v7  ;;  %v326_v12 = vmul.f32 %v324_v8, %v324_v8 }
  0x71   : > { %v549_v13 = vpop.eup %548  ;;  %v312_v15 = vmul.f32 0.6931472, %v547_v10 }
  0x72   : > { %v314_v17 = vmul.f32 0.6931472, %v549_v13  ;;  %v327_v18 = vmul.f32 %v325_v11, %v323_v7  ;;  %v328_v19 = vmul.f32 %v326_v12, %v324_v8 }
  0x73   : > { %v315_v20 = vsub.f32 %v308_v14, %v312_v15 }
  0x74   : > { %v316_v21 = vsub.f32 %v310_v16, %v314_v17 }
  0x75   : > { %v329_v22 = vmul.f32 %v327_v18, %v315_v20 }
  0x76   : > { %v330_v23 = vmul.f32 %v328_v19, %v316_v21 }
  0x78   : > { %v334_v25 = vadd.f32 %v330_v23, %v329_v22 }
  0x7a   : > { %v336_v26 = vadd.f32 %v335_v24, %v334_v25 }
  0x7c   : > { %337 = vst [vmem:[%s820_s21] sm:$0x1] %v336_v26 }
  0x7d   : > { %637 = shalt.err (!%p634_p13)
}
  0x7e   : > { %472 = dma.vmem_to_hbm [thread:$0]  (%p765_p9), %s350_s16, 16, %s352_s18, %s339_s20  }
  0x7f PF: > { %s363_s29 = sand.u32 1, %s676_s9   ;;  %p482_p0 = pnand %p456_p12, %p772_p11 }
  0x80   : > { %s364_s4 = scalar_lea.sflag [#allocation4], %s363_s29 }
  0x81   : > { %p483_p1 = pneg %p482_p0 }
  0x83   : > { %671 = dma.done.wait (%p483_p1), %s364_s4, 16  }
  0x84   : > { %673 = vsyncadd (%p483_p1), %s364_s4, 4294967280  ;;  %s21_s14 = sadd.s32 1, %s696_s14   ;;  %s877_s9 = smov %s680_s10 }
  0x85   : > { %p18_p2 = scmp.ge.s32.totalorder %s21_s14, 4   ;;  %s878_s10 = smov %s684_s11 }
  0x86   : > { %s879_s11 = smov %s770_s23  ;;  %s880_s12 = smov %s692_s13 }
  0x87   : > { %s881_s13 = smov %s883_s17  ;;  %20 = sbr.rel (!%p18_p2) target bundleno = 8 (0x8), region = 90 }
  0x8c   :  { %369 = vsyncpa [#allocation3], 1 }
  0x8d   :  { %371 = vsyncpa [#allocation3 + $0x1], 1 }
  0x8e   :  { %372 = vsyncpa [#allocation6], 1 }
  0x8f   :  { %374 = vsyncpa [#allocation6 + $0x1], 1 }
  0x90   :  { %375 = vsyncpa [#allocation4], 1 }
  0x91   :  { %377 = vsyncpa [#allocation4 + $0x1], 1 }

</bundles_post_ra>
